<compile_context>
chip_gen: v7x
topology: tpu7x:2x2x1
jax: 0.10.0
libtpu: 0.0.40
codegen_flags: <defaults>
</compile_context>

<pallas_src>
import functools

import numpy as np

import jax
import jax.numpy as jnp
from jax.experimental import pallas as pl
from jax.experimental.pallas import tpu as pltpu


def _round_up(x, m):
    return ((x + m - 1) // m) * m


def _ceil_div(a, b):
    return -(-a // b)


# ----------------------------------------------------------------------------
# Fused kernel: per-pixel normalization over the bin axis + bin-weighted sum.
#   x_ref:    (K, T)  logits/probs for T pixels, K bins (K in sublanes)
#   bins_ref: (K, 1)  depth value of each bin (broadcasts over lanes)
#   o_ref:    (1, T)  predicted depth per pixel (lane-dense store)
# ----------------------------------------------------------------------------
def _depth_bin_kernel(x_ref, bins_ref, o_ref, *, norm_strategy, eps_num, eps_den):
    x = x_ref[...].astype(jnp.float32)      # in-VMEM upcast (bf16 inputs OK)
    b = bins_ref[...]                       # (K, 1)

    if norm_strategy == "linear":
        # relu only; the +eps is folded into the reductions as constants.
        p = jnp.maximum(x, 0.0)
        num = jnp.sum(p * b, axis=0, keepdims=True) + eps_num   # (1, T)
        den = jnp.sum(p, axis=0, keepdims=True) + eps_den       # (1, T)
    elif norm_strategy == "softmax":
        # NOTE: this branch is EUP-bound (K*T exp per step), not HBM-bound.
        m = jnp.max(x, axis=0, keepdims=True)
        p = jnp.exp(x - m)
        num = jnp.sum(p * b, axis=0, keepdims=True)
        den = jnp.sum(p, axis=0, keepdims=True)
    elif norm_strategy == "sigmoid":
        p = jax.nn.sigmoid(x)
        num = jnp.sum(p * b, axis=0, keepdims=True)
        den = jnp.sum(p, axis=0, keepdims=True)
    else:
        raise ValueError(f"unknown norm_strategy: {norm_strategy}")

    # Exact reciprocal (EUP) keeps the result bit-close to a true divide while
    # freeing the VPU divide sequence; only T values per step either way.
    o_ref[...] = (num * pl.reciprocal(den, approx=False)).astype(o_ref.dtype)


# ----------------------------------------------------------------------------
# Wrapper: DepthBinPrediction.forward
#   prob: (N, K, H, W)  ->  depth: (N, 1, H, W)
# ----------------------------------------------------------------------------
def depth_bin_prediction(
    prob,
    *,
    min_depth=0.001,
    max_depth=10.0,
    n_bins=256,
    bins_strategy="UD",
    norm_strategy="linear",
    eps=0.1,
    max_lane_tile=8192,
):
    n, k, h, w = prob.shape
    assert k == n_bins, (k, n_bins)

    # Bin centers: tiny constant K-vector, built host-side with numpy so the
    # eps fold-in constants below are plain Python floats.
    if bins_strategy == "UD":
        bins_np = np.linspace(min_depth, max_depth, n_bins, dtype=np.float32)
    elif bins_strategy == "SID":
        # torch.logspace(min, max) == 10**min .. 10**max; np.logspace matches.
        bins_np = np.logspace(min_depth, max_depth, n_bins, dtype=np.float32)
    else:
        raise ValueError(f"unknown bins_strategy: {bins_strategy}")
    bins = jnp.asarray(bins_np).reshape(k, 1)

    # Hoisted eps contributions (only used by the 'linear' strategy).
    eps_num = float(eps * bins_np.sum())
    eps_den = float(eps * n_bins)

    hw = h * w
    # Free reshape, no transpose, no pad, no dtype change (bf16 stays bf16).
    x = prob.reshape(n, k, hw)

    # Lane tile: multiple of 128, as large as allowed, but capped so the grid
    # has >= ~4 steps even for a single small image (keeps both v7x TCs busy).
    hw_128 = _round_up(hw, 128)
    min_steps = 4
    tiles_wanted = max(1, _ceil_div(min_steps, n))
    lane_tile = min(
        max_lane_tile,
        hw_128,
        _round_up(_ceil_div(hw_128, tiles_wanted), 128),
    )
    grid = (n, pl.cdiv(hw, lane_tile))      # last block may overhang (masked)

    in_dtype_bytes = jnp.dtype(x.dtype).itemsize
    # Double-buffered input block + double-buffered output row + slack.
    vmem_needed = 2 * k * lane_tile * in_dtype_bytes + 2 * lane_tile * 4 + (k * 4)
    vmem_limit = min(max(int(1.5 * vmem_needed) + (2 << 20), 16 << 20), 100 << 20)

    cost = pl.CostEstimate(
        flops=5 * n * k * hw,
        transcendentals=(n * k * hw) if norm_strategy in ("softmax", "sigmoid") else 0,
        bytes_accessed=n * k * hw * in_dtype_bytes + n * hw * 4,
    )

    out = pl.pallas_call(
        functools.partial(
            _depth_bin_kernel,
            norm_strategy=norm_strategy,
            eps_num=eps_num,
            eps_den=eps_den,
        ),
        out_shape=jax.ShapeDtypeStruct((n, 1, hw), jnp.float32),
        grid=grid,
        in_specs=[
            # (N, K, HW): one image, all K bins, one lane tile of pixels.
            pl.BlockSpec((None, k, lane_tile), lambda i, j: (i, 0, j)),
            # bins: (K, 1), resident across the whole grid.
            pl.BlockSpec((k, 1), lambda i, j: (0, 0)),
        ],
        out_specs=pl.BlockSpec((None, 1, lane_tile), lambda i, j: (i, 0, j)),
        compiler_params=pltpu.CompilerParams(
            dimension_semantics=("parallel", "parallel"),
            vmem_limit_bytes=vmem_limit,
        ),
        cost_estimate=cost,
    )(x, bins)

    return out.reshape(n, 1, h, w)


if __name__ == "__main__":
    key = jax.random.PRNGKey(0)

    batch, n_bins, h, w = 2, 256, 16, 16
    prob = jax.random.normal(key, (batch, n_bins, h, w), jnp.float32)

    bins_ref = jnp.linspace(0.001, 10.0, n_bins, dtype=jnp.float32)

    # ----- linear norm (module default) -----
    depth = depth_bin_prediction(
        prob,
        min_depth=0.001,
        max_depth=10.0,
        n_bins=n_bins,
        bins_strategy="UD",
        norm_strategy="linear",
    )
    depth = jax.block_until_ready(depth)
    assert depth.shape == (batch, 1, h, w), depth.shape
    assert bool(jnp.all(jnp.isfinite(depth)))

    p_ref = jnp.maximum(prob, 0.0) + 0.1
    p_ref = p_ref / jnp.sum(p_ref, axis=1, keepdims=True)
    ref = jnp.einsum("ikhw,k->ihw", p_ref, bins_ref)[:, None]
    assert bool(jnp.allclose(depth, ref, rtol=1e-4, atol=1e-4))

    # ----- softmax norm -----
    depth_sm = depth_bin_prediction(
        prob,
        min_depth=0.001,
        max_depth=10.0,
        n_bins=n_bins,
        bins_strategy="UD",
        norm_strategy="softmax",
    )
    depth_sm = jax.block_until_ready(depth_sm)
    p_sm = jax.nn.softmax(prob, axis=1)
    ref_sm = jnp.einsum("ikhw,k->ihw", p_sm, bins_ref)[:, None]
    assert bool(jnp.allclose(depth_sm, ref_sm, rtol=1e-4, atol=1e-4))

    print("KERNEL_OK")
</pallas_src>

<mosaic_0001>
module attributes {stable_mosaic.version = 11 : i64} {
  func.func @_depth_bin_kernel(%arg0: i32, %arg1: i32, %arg2: memref<1x256x128xf32, #tpu.memory_space<vmem>>, %arg3: memref<256x1xf32, #tpu.memory_space<vmem>>, %arg4: memref<1x1x128xf32, #tpu.memory_space<vmem>>) attributes {dimension_semantics = [#tpu.dimension_semantics<parallel>, #tpu.dimension_semantics<parallel>], iteration_bounds = array<i64: 2, 2>, scalar_prefetch = 0 : i64, scratch_operands = 0 : i64, tpu.core_type = #tpu.core_type<tc>, window_params = [{transform_indices = @transform_0, window_bounds = array<i64: 1, 256, 128>}, {pipeline_mode = #tpu.pipeline_mode<synchronous>, transform_indices = @transform_1, window_bounds = array<i64: 256, 1>}, {transform_indices = @transform_2, window_bounds = array<i64: 1, 1, 128>}]} {
    %c0 = arith.constant 0 : index
    %c0_0 = arith.constant 0 : index
    %c0_1 = arith.constant 0 : index
    %0 = vector.load %arg2[%c0, %c0_0, %c0_1] : memref<1x256x128xf32, #tpu.memory_space<vmem>>, vector<1x256x128xf32>
    %1 = vector.shape_cast %0 : vector<1x256x128xf32> to vector<256x128xf32>
    %c0_2 = arith.constant 0 : index
    %c0_3 = arith.constant 0 : index
    %2 = vector.load %arg3[%c0_2, %c0_3] : memref<256x1xf32, #tpu.memory_space<vmem>>, vector<256x1xf32>
    %cst = arith.constant 0.000000e+00 : f32
    %3 = vector.broadcast %cst : f32 to vector<256x128xf32>
    %4 = arith.maximumf %1, %3 : vector<256x128xf32>
    %5 = vector.broadcast %2 : vector<256x1xf32> to vector<256x128xf32>
    %6 = arith.mulf %4, %5 : vector<256x128xf32>
    %cst_4 = arith.constant dense<0.000000e+00> : vector<128xf32>
    %7 = vector.multi_reduction <add>, %6, %cst_4 [0] : vector<256x128xf32> to vector<128xf32>
    %8 = vector.shape_cast %7 : vector<128xf32> to vector<1x128xf32>
    %cst_5 = arith.constant 128.012802 : f32
    %9 = vector.broadcast %cst_5 : f32 to vector<1x128xf32>
    %10 = arith.addf %8, %9 : vector<1x128xf32>
    %cst_6 = arith.constant dense<0.000000e+00> : vector<128xf32>
    %11 = vector.multi_reduction <add>, %4, %cst_6 [0] : vector<256x128xf32> to vector<128xf32>
    %12 = vector.shape_cast %11 : vector<128xf32> to vector<1x128xf32>
    %cst_7 = arith.constant 2.560000e+01 : f32
    %13 = vector.broadcast %cst_7 : f32 to vector<1x128xf32>
    %14 = arith.addf %12, %13 : vector<1x128xf32>
    %15 = tpu.reciprocal %14 : vector<1x128xf32> -> vector<1x128xf32>
    %16 = arith.mulf %10, %15 : vector<1x128xf32>
    %c0_8 = arith.constant 0 : index
    %c0_9 = arith.constant 0 : index
    %c0_10 = arith.constant 0 : index
    %17 = vector.load %arg4[%c0_8, %c0_9, %c0_10] : memref<1x1x128xf32, #tpu.memory_space<vmem>>, vector<1x1x128xf32>
    %18 = vector.shape_cast %17 : vector<1x1x128xf32> to vector<1x128xf32>
    %19 = vector.shape_cast %16 : vector<1x128xf32> to vector<1x1x128xf32>
    tpu.vector_store %arg4[%c0_8, %c0_9, %c0_10], %19 {strides = array<i32>} : memref<1x1x128xf32, #tpu.memory_space<vmem>>, vector<1x1x128xf32>,
    return
  }
  func.func @transform_0(%arg0: i32, %arg1: i32) -> (i32, i32, i32) {
    %c0_i32 = arith.constant 0 : i32
    %c0_i32_0 = arith.constant 0 : i32
    return %arg0, %c0_i32, %arg1 : i32, i32, i32
  }
  func.func @transform_1(%arg0: i32, %arg1: i32) -> (i32, i32) {
    %c0_i32 = arith.constant 0 : i32
    %c0_i32_0 = arith.constant 0 : i32
    %c0_i32_1 = arith.constant 0 : i32
    return %c0_i32, %c0_i32_0 : i32, i32
  }
  func.func @transform_2(%arg0: i32, %arg1: i32) -> (i32, i32, i32) {
    %c0_i32 = arith.constant 0 : i32
    %c0_i32_0 = arith.constant 0 : i32
    return %arg0, %c0_i32, %arg1 : i32, i32, i32
  }
}

</mosaic_0001>

<bundles_post_ra>
// kernel: tpu_custom_call.1
= control target key start
LH: loop header
LB: loop body
LE: loop exit
PB: predicated region body
PF: predicated region fallthrough
CT: control target
= control target key end

     0   :  { %7 = vsyncpa [#allocation3], 0  ;;  %s1428_s0 = inlined_call_operand.hbm [shape: f32[2,256,256], index: 0, kind: input, shape index: {}]   ;;  %s1429_s1 = inlined_call_operand.vmem [shape: f32[256,1], index: 1, kind: input, shape index: {}]   ;;  %s1430_s2 = inlined_call_operand.hbm [shape: f32[2,1,256], index: 2, kind: output, shape index: {}]  }
   0x1   :  { %9 = vsyncpa [#allocation3 + $0x1], 0 }
   0x2   :  { %10 = vsyncpa [#allocation4], 0 }
   0x3   :  { %12 = vsyncpa [#allocation4 + $0x1], 0  ;;  %s891_s9 = smov 0   ;;  %s893_s10 = smov 0  }
   0x4   :  { %s895_s11 = smov 0   ;;  %s897_s12 = smov 0  }
   0x5   :  { %s899_s13 = smov 0   ;;  %s901_s14 = smov 0  }
   0x6   :  { %s903_s15 = smov 0   ;;  %s905_s16 = smov 0  }
   0x7 LB: > { %s641_s17 = sadd.s32 4294967295, %s868_s16   ;;  %s642_s18 = sadd.s32 4294967294, %s868_s16   ;;  %s868_s16 = sphi %s905_s16, %s18_s16   ;;  %s864_s15 = sphi %s903_s15, %s1445_s15   ;;  %s860_s14 = sphi %s901_s14, %s1444_s14   ;;  %s856_s13 = sphi %s899_s13, %s1443_s13   ;;  %s852_s12 = sphi %s897_s12, %s1442_s12   ;;  %s848_s11 = sphi %s895_s11, %s1441_s11   ;;  %s844_s10 = sphi %s893_s10, %s1440_s10   ;;  %s840_s9 = sphi %s891_s9, %s1439_s9  }
   0x8   : > { %s27_s19 = sadd.s32 1, %s860_s14  ;;  %s30_s20 = sadd.s32 1, %s864_s15 }
   0x9   : > { %p28_p0 = scmp.ge.s32.totalorder %s27_s19, 2  ;;  %s39_s21 = sadd.s32 1, %s848_s11 }
   0xa   : > { %p46_p1 = scmp.ne.s32.totalorder %s848_s11, %s844_s10  ;;  %p47_p2 = scmp.eq.s32.totalorder %s868_s16, 0 }
   0xb   : > { %s1447_s19 = smov (%p28_p0, %s27_s19), 0  ;;  %s1449_s20 = smov (!%p28_p0, %s30_s20), %s864_s15 }
   0xc   : > { %s35_s22 = ssub.s32 %s860_s14, %s1447_s19  ;;  %p944_p3 = por %p47_p2, %p46_p1 }
   0xd   : > { %p32_p4 = scmp.ge.s32.totalorder %s1449_s20, 2  ;;  %p52_p5 = scmp.ne.s32.totalorder %s844_s10, %s840_s9 }
   0xe   : > { %p53_p6 = scmp.eq.s32.totalorder %s641_s17, 0  ;;  %p99_p7 = scmp.eq.s32.totalorder %s641_s17, 3 }
   0xf   : > { %s1451_s20 = smov (%p32_p4, %s1449_s20), 0  ;;  %p105_p10 = scmp.eq.s32.totalorder %s642_s18, 3 }
  0x10   : > { %p952_p8 = por %p53_p6, %p52_p5  ;;  %p956_p9 = por %p99_p7, %p46_p1 }
  0x11   : > { %s34_s26 = ssub.s32 %s864_s15, %s1451_s20  ;;  %p962_p12 = por %p105_p10, %p52_p5 }
  0x12   : > { %s1434_s25 = scalar_select %p956_p9, 1, 0 }
  0x13   : > { %s36_s27 = sor.u32 %s35_s22, %s34_s26  ;;  %p666_p13 = scmp.lt.s32.totalorder %s868_s16, 4 }
  0x14   : > { %p37_p11 = scmp.eq.s32.totalorder %s36_s27, 0  ;;  %s128_s29 = sand.u32 1, %s848_s11  }
  0x15   : > { %s1435_s28 = scalar_select %p962_p12, 1, 0 }
  0x16   : > { %s969_s30 = scalar_select %p37_p11, %s848_s11, %s39_s21  }
  0x17   : > { %s645_s3 = sshll.u32 %s128_s29, 8  ;;  %s646_s4 = sshll.u32 %s864_s15, 6 }
  0x18   : > { %s137_s5 = sadd.s32 %s860_s14, %s646_s4  ;;  %s132_s6 = scalar_lea.vmem [#allocation2], %s645_s3 }
  0x19   : > { %s140_s7 = sshll.u32 %s132_s6, 4  ;;  %s647_s8 = sshll.u32 %s137_s5, 7  ;;  %s973_s7 = int_to_ptr.vmem [resolvable:$true] %s140_s7 }
  0x1a   : > { %s978_s22 = scalar_lea.hbm %s1428_s0, %s647_s8  ;;  %p982_p0 = pnand %p666_p13, %p944_p3 }
  0x1b   : > { %s986_s26 = scalar_lea.sflag [#allocation3], %s128_s29  ;;  %s740_s27 = scalar_lea.hbm %s978_s22, 4096 }
  0x1c   : > { %p741_p1 = scmp.ne.s32.totalorder %s978_s22, %s740_s27  ;;  %p742_p2 = pneg %p982_p0 }
  0x1d   : > { %s745_s4 = scalar_lea.hbm %s1428_s0, 16384  ;;  %p746_p3 = scmp.lt.u32.totalorder %s978_s22, %s1428_s0 }
  0x1e   : > { %p743_p4 = pnand %p742_p2, %p741_p1  ;;  %p747_p6 = scmp.lt.u32.totalorder %s745_s4, %s740_s27 }
  0x1f   : > { %p749_p10 = scmp.lt.u32.totalorder %s740_s27, %s978_s22 }
  0x20   : > { %p744_p5 = pneg %p743_p4  ;;  %p748_p7 = por %p747_p6, %p746_p3 }
  0x22   : > { %p750_p11 = por %p749_p10, %p748_p7 }
  0x24   : > { %p751_p13 = pnand %p750_p11, %p744_p5 }
  0x26   : > { %754 = shalt.err (!%p751_p13)
}
  0x27   : > { %s755_s29 = scalar_lea.vmem %s973_s7, 4096  ;;  %s870_s8 = smov [#allocation2]  }
  0x28   : > { %p756_p1 = scmp.ne.s32.totalorder %s973_s7, %s755_s29  ;;  %s760_s17 = sshll.u32 %s870_s8, 4  ;;  %s761_s17 = int_to_ptr.vmem [resolvable:$false] %s760_s17 }
  0x29   : > { %s762_s18 = scalar_lea.vmem %s761_s17, 8192  ;;  %p763_p9 = scmp.lt.s32.totalorder %s973_s7, %s761_s17 }
  0x2a   : > { %p758_p4 = pnand %p756_p1, %p742_p2  ;;  %p764_p3 = scmp.lt.s32.totalorder %s762_s18, %s755_s29 }
  0x2c   : > { %p759_p12 = pneg %p758_p4  ;;  %p765_p6 = por %p764_p3, %p763_p9 }
  0x2e   : > { %p766_p7 = pnand %p765_p6, %p759_p12 }
  0x30   : > { %769 = shalt.err (!%p766_p7)
}
  0x31   : > { %s871_s27 = smov 256   ;;  %s872_s23 = smov 128  }
  0x32   : > { %s873_s3 = smov 8   ;;  %p648_p2 = scmp.ge.s32.totalorder %s868_s16, 1 }
  0x33   : > { %661 = dma.hbm_to_vmem [thread:$0]  (!%p982_p0), %s978_s22, 4096, %s973_s7, %s986_s26, %s871_s27, %s872_s23, %s873_s3  }
  0x34   : > { %p148_p5 = scmp.lt.s32.totalorder %s868_s16, 5 }
  0x36   : > { %p149_p10 = pnand %p648_p2, %p148_p5 }
  0x37   : > { %s1017_s4 = sand.u32 (!%p149_p10), 1, %s844_s10  }
  0x38   : > { %152 = sbr.rel (%p149_p10) target bundleno = 292 (0x124), region = 28  ;;  %s649_s5 = sshll.u32 (!%p149_p10), %s1017_s4, 8 }
  0x39   : > { %s155_s6 = scalar_lea.sflag (!%p149_p10), [#allocation3], %s1017_s4  ;;  %s1021_s29 = scalar_lea.vmem (!%p149_p10), [#allocation2], %s649_s5 }
  0x3f   : > { %831 = dma.done.wait (%p952_p8), %s155_s6, 4096  }
  0x40   : > { %833 = vsyncadd (%p952_p8), %s155_s6, 4294963200  ;;  %v874_v0 = vmov 0   ;;  %v212_v1 = vld [vmem:[%s1429_s1 + $0x10] sm:$0xff]  ;;  %v210_v2 = vld [vmem:[%s1429_s1] sm:$0xff]  ;;  %s177_s22 = scalar_lea.vmem [#allocation5], %s1017_s4  ;;  %p1437_p9 = scmp.ne.s32.totalorder %s1434_s25, 0 }
  0x41   : > { %737 = vset.pattern.permute.xlu1 %v874_v0  ;;  %736 = vset.pattern.permute.xlu0 %v874_v0  ;;  %v213_v3 = vld [vmem:[%s1429_s1 + $0x18] sm:$0xff]  ;;  %v211_v4 = vld [vmem:[%s1429_s1 + $0x8] sm:$0xff]  ;;  %v214_v6 = vld [vmem:[%s1429_s1 + $0x20] sm:$0xff]  ;;  %s560_s21 = sshll.u32 %s177_s22, 4  ;;  %s875_s18 = smov [#allocation5]   ;;  %s1376_s21 = int_to_ptr.vmem [resolvable:$true] %s560_s21 }
  0x42   : > { %286 = vperm.xlu1 %737, %v212_v1   ;;  %276 = vperm.xlu0 %736, %v210_v2   ;;  %v215_v5 = vld [vmem:[%s1429_s1 + $0x28] sm:$0xff]  ;;  %v217_v7 = vld [vmem:[%s1429_s1 + $0x38] sm:$0xff]  ;;  %v216_v8 = vld [vmem:[%s1429_s1 + $0x30] sm:$0xff]  ;;  %s774_s24 = sshll.u32 %s875_s18, 4  ;;  %s775_s24 = int_to_ptr.vmem [resolvable:$false] %s774_s24 }
  0x43   : > { %v219_v9 = vld [vmem:[%s1429_s1 + $0x48] sm:$0xff]  ;;  %v218_v10 = vld [vmem:[%s1429_s1 + $0x40] sm:$0xff]  ;;  %v221_v11 = vld [vmem:[%s1429_s1 + $0x58] sm:$0xff]  ;;  %s776_s27 = scalar_lea.vmem %s775_s24, 32  ;;  %p777_p11 = scmp.lt.s32.totalorder %s1376_s21, %s775_s24 }
  0x44   : > { %v220_v12 = vld [vmem:[%s1429_s1 + $0x50] sm:$0xff]  ;;  %v223_v13 = vld [vmem:[%s1429_s1 + $0x68] sm:$0xff]  ;;  %v222_v14 = vld [vmem:[%s1429_s1 + $0x60] sm:$0xff] }
  0x45   : > { %v225_v15 = vld [vmem:[%s1429_s1 + $0x78] sm:$0xff]  ;;  %v224_v16 = vld [vmem:[%s1429_s1 + $0x70] sm:$0xff]  ;;  %v227_v17 = vld [vmem:[%s1429_s1 + $0x88] sm:$0xff] }
  0x46   : > { %291 = vperm.xlu1 %737, %v213_v3   ;;  %281 = vperm.xlu0 %736, %v211_v4   ;;  %v226_v18 = vld [vmem:[%s1429_s1 + $0x80] sm:$0xff]  ;;  %v229_v19 = vld [vmem:[%s1429_s1 + $0x98] sm:$0xff]  ;;  %v228_v20 = vld [vmem:[%s1429_s1 + $0x90] sm:$0xff] }
  0x47   : > { %v231_v21 = vld [vmem:[%s1429_s1 + $0xa8] sm:$0xff]  ;;  %v230_v22 = vld [vmem:[%s1429_s1 + $0xa0] sm:$0xff]  ;;  %v233_v25 = vld [vmem:[%s1429_s1 + $0xb8] sm:$0xff] }
  0x48   : > { %v1094_v23 = vld [vmem:[%s1021_s29] sm:$0xff]  ;;  %v1097_v24 = vld [vmem:[%s1021_s29 + $0x8] sm:$0xff]  ;;  %v232_v26 = vld [vmem:[%s1429_s1 + $0xb0] sm:$0xff] }
  0x49   : > { %v242_v27 = vmax.f32 %v1094_v23, 0.0  ;;  %v243_v28 = vmax.f32 %v1097_v24, 0.0  ;;  %v1108_v29 = vld [vmem:[%s1021_s29 + $0x10] sm:$0xff]  ;;  %v235_v30 = vld [vmem:[%s1429_s1 + $0xc8] sm:$0xff]  ;;  %v234_v31 = vld [vmem:[%s1429_s1 + $0xc0] sm:$0xff] }
  0x4a   : > { %301 = vperm.xlu1 %737, %v215_v5   ;;  %296 = vperm.xlu0 %736, %v214_v6   ;;  %v244_v32 = vmax.f32 %v1108_v29, 0.0  ;;  %v1122_v34 = vld [vmem:[%s1021_s29 + $0x18] sm:$0xff]  ;;  %v236_v36 = vld [vmem:[%s1429_s1 + $0xd0] sm:$0xff]  ;;  %v1134_v39 = vld [vmem:[%s1021_s29 + $0x20] sm:$0xff] }
  0x4b   : > { %v504_v33 = vadd.f32 %v243_v28, %v242_v27  ;;  %v237_v35 = vld [vmem:[%s1429_s1 + $0xd8] sm:$0xff]  ;;  %v245_v37 = vmax.f32 %v1122_v34, 0.0  ;;  %v239_v40 = vld [vmem:[%s1429_s1 + $0xe8] sm:$0xff]  ;;  %v238_v41 = vld [vmem:[%s1429_s1 + $0xe0] sm:$0xff]  ;;  %v246_v42 = vmax.f32 %v1134_v39, 0.0 }
  0x4c   : > { %v1146_v44 = vld [vmem:[%s1021_s29 + $0x28] sm:$0xff]  ;;  %v241_v45 = vld [vmem:[%s1429_s1 + $0xf8] sm:$0xff]  ;;  %v240_v46 = vld [vmem:[%s1429_s1 + $0xf0] sm:$0xff] }
  0x4d   : > { %v505_v38 = vadd.f32 %v504_v33, %v244_v32  ;;  %v247_v47 = vmax.f32 %v1146_v44, 0.0  ;;  %v1158_v49 = vld [vmem:[%s1021_s29 + $0x30] sm:$0xff]  ;;  %v1164_v52 = vld [vmem:[%s1021_s29 + $0x38] sm:$0xff]  ;;  %v1170_v55 = vld [vmem:[%s1021_s29 + $0x40] sm:$0xff] }
  0x4e   : > { %311 = vperm.xlu1 %737, %v217_v7   ;;  %306 = vperm.xlu0 %736, %v216_v8   ;;  %v248_v50 = vmax.f32 %v1158_v49, 0.0  ;;  %v249_v53 = vmax.f32 %v1164_v52, 0.0  ;;  %v250_v56 = vmax.f32 %v1170_v55, 0.0  ;;  %v1176_v58 = vld [vmem:[%s1021_s29 + $0x48] sm:$0xff]  ;;  %v1182_v61 = vld [vmem:[%s1021_s29 + $0x50] sm:$0xff]  ;;  %v1188_v0 = vld [vmem:[%s1021_s29 + $0x58] sm:$0xff] }
  0x4f   : > { %v506_v43 = vadd.f32 %v505_v38, %v245_v37  ;;  %v251_v59 = vmax.f32 %v1176_v58, 0.0  ;;  %v252_v62 = vmax.f32 %v1182_v61, 0.0  ;;  %v253_v1 = vmax.f32 %v1188_v0, 0.0  ;;  %v1194_v3 = vld [vmem:[%s1021_s29 + $0x60] sm:$0xff]  ;;  %v1200_v6 = vld [vmem:[%s1021_s29 + $0x68] sm:$0xff] }
  0x50   : > { %v254_v4 = vmax.f32 %v1194_v3, 0.0  ;;  %v255_v7 = vmax.f32 %v1200_v6, 0.0  ;;  %v1242_v33 = vld [vmem:[%s1021_s29 + $0xa0] sm:$0xff]  ;;  %v1248_v38 = vld [vmem:[%s1021_s29 + $0xa8] sm:$0xff]  ;;  %v209_v3 = vld [vmem:[%s1021_s29 + $0xf8] sm:$0xff] }
  0x51   : > { %v507_v48 = vadd.f32 %v506_v43, %v246_v42  ;;  %v1254_v43 = vld [vmem:[%s1021_s29 + $0xb0] sm:$0xff] }
  0x52   : > { %321 = vperm.xlu1 %737, %v219_v9   ;;  %316 = vperm.xlu0 %736, %v218_v10   ;;  %v1206_v9 = vld [vmem:[%s1021_s29 + $0x70] sm:$0xff] }
  0x53   : > { %v508_v51 = vadd.f32 %v507_v48, %v247_v47  ;;  %v256_v10 = vmax.f32 %v1206_v9, 0.0  ;;  %v1260_v48 = vld [vmem:[%s1021_s29 + $0xb8] sm:$0xff] }
  0x55   : > { %v509_v54 = vadd.f32 %v508_v51, %v248_v50 }
  0x56   : > { %331 = vperm.xlu1 %737, %v221_v11   ;;  %326 = vperm.xlu0 %736, %v220_v12   ;;  %v1212_v12 = vld [vmem:[%s1021_s29 + $0x78] sm:$0xff] }
  0x57   : > { %v510_v57 = vadd.f32 %v509_v54, %v249_v53 }
  0x59   : > { %v511_v60 = vadd.f32 %v510_v57, %v250_v56  ;;  %v265_v57 = vmax.f32 %v1260_v48, 0.0 }
  0x5a   : > { %341 = vperm.xlu1 %737, %v223_v13   ;;  %336 = vperm.xlu0 %736, %v222_v14   ;;  %v257_v13 = vmax.f32 %v1212_v12, 0.0 }
  0x5b   : > { %v512_v63 = vadd.f32 %v511_v60, %v251_v59 }
  0x5d   : > { %v513_v2 = vadd.f32 %v512_v63, %v252_v62  ;;  %v1266_v63 = vld [vmem:[%s1021_s29 + $0xc0] sm:$0xff] }
  0x5e   : > { %351 = vperm.xlu1 %737, %v225_v15   ;;  %346 = vperm.xlu0 %736, %v224_v16   ;;  %v1218_v15 = vld [vmem:[%s1021_s29 + $0x80] sm:$0xff] }
  0x5f   : > { %v514_v5 = vadd.f32 %v513_v2, %v253_v1  ;;  %v258_v16 = vmax.f32 %v1218_v15, 0.0 }
  0x61   : > { %v515_v8 = vadd.f32 %v514_v5, %v254_v4 }
  0x62   : > { %361 = vperm.xlu1 %737, %v227_v17   ;;  %356 = vperm.xlu0 %736, %v226_v18   ;;  %v1224_v18 = vld [vmem:[%s1021_s29 + $0x88] sm:$0xff] }
  0x63   : > { %v516_v11 = vadd.f32 %v515_v8, %v255_v7 }
  0x65   : > { %v517_v14 = vadd.f32 %v516_v11, %v256_v10 }
  0x66   : > { %371 = vperm.xlu1 %737, %v229_v19   ;;  %366 = vperm.xlu0 %736, %v228_v20   ;;  %v259_v19 = vmax.f32 %v1224_v18, 0.0 }
  0x67   : > { %v518_v17 = vadd.f32 %v517_v14, %v257_v13  ;;  %v266_v14 = vmax.f32 %v1266_v63, 0.0 }
  0x69   : > { %v519_v20 = vadd.f32 %v518_v17, %v258_v16 }
  0x6a   : > { %381 = vperm.xlu1 %737, %v231_v21   ;;  %376 = vperm.xlu0 %736, %v230_v22   ;;  %v1230_v21 = vld [vmem:[%s1021_s29 + $0x90] sm:$0xff] }
  0x6b   : > { %v260_v22 = vmax.f32 %v1230_v21, 0.0 }
  0x6e   : > { %391 = vperm.xlu1 %737, %v233_v25   ;;  %386 = vperm.xlu0 %736, %v232_v26   ;;  %v520_v25 = vadd.f32 %v519_v20, %v259_v19  ;;  %v1236_v26 = vld [vmem:[%s1021_s29 + $0x98] sm:$0xff] }
  0x72   : > { %401 = vperm.xlu1 %737, %v235_v30   ;;  %396 = vperm.xlu0 %736, %v234_v31   ;;  %v261_v30 = vmax.f32 %v1236_v26, 0.0  ;;  %v521_v31 = vadd.f32 %v520_v25, %v260_v22 }
  0x76   : > { %411 = vperm.xlu1 %737, %v237_v35   ;;  %406 = vperm.xlu0 %736, %v236_v36   ;;  %v262_v35 = vmax.f32 %v1242_v33, 0.0  ;;  %v522_v36 = vadd.f32 %v521_v31, %v261_v30  ;;  %v1278_v31 = vld [vmem:[%s1021_s29 + $0xc8] sm:$0xff] }
  0x77   : > { %v267_v24 = vmax.f32 %v1278_v31, 0.0 }
  0x7a   : > { %421 = vperm.xlu1 %737, %v239_v40   ;;  %416 = vperm.xlu0 %736, %v238_v41   ;;  %v263_v40 = vmax.f32 %v1248_v38, 0.0  ;;  %v523_v41 = vadd.f32 %v522_v36, %v262_v35 }
  0x7e   : > { %431 = vperm.xlu1 %737, %v241_v45   ;;  %426 = vperm.xlu0 %736, %v240_v46   ;;  %v264_v45 = vmax.f32 %v1254_v43, 0.0  ;;  %v524_v46 = vadd.f32 %v523_v41, %v263_v40 }
  0x80   : > { %v525_v60 = vadd.f32 %v524_v46, %v264_v45 }
  0x82   : > { %v526_v17 = vadd.f32 %v525_v60, %v265_v57 }
  0xc1   : > { %v287_v51 = vpop.permute.xlu1 %286  ;;  %v277_v54 = vpop.permute.xlu0 %276 }
  0xc2   : > { %v434_v8 = vmul.f32 %v277_v54, %v242_v27  ;;  %v436_v20 = vmul.f32 %v287_v51, %v244_v32  ;;  %v1288_v32 = vld [vmem:[%s1021_s29 + $0xd0] sm:$0xff] }
  0xc5   : > { %v292_v2 = vpop.permute.xlu1 %291  ;;  %v282_v5 = vpop.permute.xlu0 %281 }
  0xc6   : > { %v435_v11 = vmul.f32 %v282_v5, %v243_v28  ;;  %v437_v23 = vmul.f32 %v292_v2, %v245_v37  ;;  %v527_v28 = vadd.f32 %v526_v17, %v266_v14  ;;  %v268_v37 = vmax.f32 %v1288_v32, 0.0 }
  0xc8   : > { %v466_v25 = vadd.f32 %v435_v11, %v434_v8  ;;  %v528_v2 = vadd.f32 %v527_v28, %v267_v24 }
  0xc9   : > { %v302_v36 = vpop.permute.xlu1 %301  ;;  %v297_v41 = vpop.permute.xlu0 %296 }
  0xca   : > { %v467_v27 = vadd.f32 %v466_v25, %v436_v20  ;;  %v438_v46 = vmul.f32 %v297_v41, %v246_v42  ;;  %v439_v34 = vmul.f32 %v302_v36, %v247_v47  ;;  %v1298_v42 = vld [vmem:[%s1021_s29 + $0xd8] sm:$0xff]  ;;  %v529_v20 = vadd.f32 %v528_v2, %v268_v37 }
  0xcb   : > { %v269_v47 = vmax.f32 %v1298_v42, 0.0 }
  0xcc   : > { %v468_v29 = vadd.f32 %v467_v27, %v437_v23 }
  0xcd   : > { %v312_v51 = vpop.permute.xlu1 %311  ;;  %v307_v54 = vpop.permute.xlu0 %306  ;;  %v530_v27 = vadd.f32 %v529_v20, %v269_v47 }
  0xce   : > { %v469_v60 = vadd.f32 %v468_v29, %v438_v46  ;;  %v440_v5 = vmul.f32 %v307_v54, %v248_v50  ;;  %v441_v44 = vmul.f32 %v312_v51, %v249_v53  ;;  %v1308_v50 = vld [vmem:[%s1021_s29 + $0xe0] sm:$0xff] }
  0xcf   : > { %v270_v53 = vmax.f32 %v1308_v50, 0.0 }
  0xd0   : > { %v470_v39 = vadd.f32 %v469_v60, %v439_v34 }
  0xd1   : > { %v322_v8 = vpop.permute.xlu1 %321  ;;  %v317_v11 = vpop.permute.xlu0 %316  ;;  %v531_v54 = vadd.f32 %v530_v27, %v270_v53 }
  0xd2   : > { %v471_v17 = vadd.f32 %v470_v39, %v440_v5  ;;  %v442_v25 = vmul.f32 %v317_v11, %v250_v56  ;;  %v443_v52 = vmul.f32 %v322_v8, %v251_v59  ;;  %v1318_v56 = vld [vmem:[%s1021_s29 + $0xe8] sm:$0xff] }
  0xd3   : > { %v271_v59 = vmax.f32 %v1318_v56, 0.0 }
  0xd4   : > { %v472_v49 = vadd.f32 %v471_v17, %v441_v44 }
  0xd5   : > { %v332_v36 = vpop.permute.xlu1 %331  ;;  %v327_v41 = vpop.permute.xlu0 %326  ;;  %v532_v39 = vadd.f32 %v531_v54, %v271_v59 }
  0xd6   : > { %v473_v23 = vadd.f32 %v472_v49, %v442_v25  ;;  %v444_v28 = vmul.f32 %v327_v41, %v252_v62  ;;  %v445_v58 = vmul.f32 %v332_v36, %v253_v1  ;;  %v1328_v62 = vld [vmem:[%s1021_s29 + $0xf0] sm:$0xff]  ;;  %v273_v25 = vmax.f32 %v209_v3, 0.0  ;;  %s650_s29 = sshll.u32 %s856_s13, 1  ;;  %s546_s13 = scalar_lea.sflag [#allocation4], %s1017_s4 }
  0xd7   : > { %v272_v1 = vmax.f32 %v1328_v62, 0.0  ;;  %s556_s6 = sadd.s32 %s852_s12, %s650_s29  ;;  %s770_s12 = scalar_lea.vmem %s1376_s21, 16 }
  0xd8   : > { %v474_v55 = vadd.f32 %v473_v23, %v443_v52  ;;  %s651_s7 = sshll.u32 %s556_s6, 4  ;;  %p771_p8 = scmp.ne.s32.totalorder %s1376_s21, %s770_s12 }
  0xd9   : > { %v342_v46 = vpop.permute.xlu1 %341  ;;  %v337_v29 = vpop.permute.xlu0 %336  ;;  %v533_v6 = vadd.f32 %v532_v39, %v272_v1  ;;  %s1374_s17 = scalar_lea.hbm %s1430_s2, %s651_s7  ;;  %p778_p13 = scmp.lt.s32.totalorder %s776_s27, %s770_s12 }
  0xda   : > { %v475_v51 = vadd.f32 %v474_v55, %v444_v28  ;;  %v446_v34 = vmul.f32 %v337_v29, %v254_v4  ;;  %v447_v5 = vmul.f32 %v342_v46, %v255_v7  ;;  %p772_p12 = pnand %p771_p8, %p1437_p9 }
  0xdb   : > { %v534_v52 = vadd.f32 %v533_v6, %v273_v25  ;;  %p779_p1 = por %p778_p13, %p777_p11 }
  0xdc   : > { %v476_v61 = vadd.f32 %v475_v51, %v445_v58  ;;  %p773_p0 = pneg %p772_p12 }
  0xdd   : > { %v352_v60 = vpop.permute.xlu1 %351  ;;  %v347_v2 = vpop.permute.xlu0 %346  ;;  %v535_v15 = vrot.slane %v534_v52, 4 }
  0xde   : > { %v477_v0 = vadd.f32 %v476_v61, %v446_v34  ;;  %v448_v8 = vmul.f32 %v347_v2, %v256_v10  ;;  %v449_v17 = vmul.f32 %v352_v60, %v257_v13  ;;  %p780_p4 = pnand %p779_p1, %p773_p0 }
  0xdf   : > { %v536_v21 = vadd.f32 %v535_v15, %v534_v52 }
  0xe0   : > { %v478_v11 = vadd.f32 %v477_v0, %v447_v5 }
  0xe1   : > { %v362_v4 = vpop.permute.xlu1 %361  ;;  %v357_v44 = vpop.permute.xlu0 %356  ;;  %v537_v33 = vrot.slane %v536_v21, 2 }
  0xe2   : > { %v479_v20 = vadd.f32 %v478_v11, %v448_v8  ;;  %v450_v7 = vmul.f32 %v357_v44, %v258_v16  ;;  %v451_v9 = vmul.f32 %v362_v4, %v259_v19 }
  0xe3   : > { %v538_v43 = vadd.f32 %v537_v33, %v536_v21 }
  0xe4   : > { %v480_v49 = vadd.f32 %v479_v20, %v449_v17 }
  0xe5   : > { %v372_v36 = vpop.permute.xlu1 %371  ;;  %v367_v41 = vpop.permute.xlu0 %366  ;;  %v539_v63 = vrot.slane %v538_v43, 1 }
  0xe6   : > { %v481_v10 = vadd.f32 %v480_v49, %v450_v7  ;;  %v452_v23 = vmul.f32 %v367_v41, %v260_v22  ;;  %v453_v28 = vmul.f32 %v372_v36, %v261_v30 }
  0xe8   : > { %v482_v27 = vadd.f32 %v481_v10, %v451_v9 }
  0xe9   : > { %v382_v12 = vpop.permute.xlu1 %381  ;;  %v377_v13 = vpop.permute.xlu0 %376 }
  0xea   : > { %v483_v55 = vadd.f32 %v482_v27, %v452_v23  ;;  %v454_v16 = vmul.f32 %v377_v13, %v262_v35  ;;  %v455_v19 = vmul.f32 %v382_v12, %v263_v40 }
  0xec   : > { %v484_v46 = vadd.f32 %v483_v55, %v453_v28 }
  0xed   : > { %v392_v29 = vpop.permute.xlu1 %391  ;;  %v387_v18 = vpop.permute.xlu0 %386 }
  0xee   : > { %v485_v58 = vadd.f32 %v484_v46, %v454_v16  ;;  %v456_v22 = vmul.f32 %v387_v18, %v264_v45  ;;  %v457_v30 = vmul.f32 %v392_v29, %v265_v57 }
  0xf0   : > { %v486_v51 = vadd.f32 %v485_v58, %v455_v19 }
  0xf1   : > { %v402_v54 = vpop.permute.xlu1 %401  ;;  %v397_v26 = vpop.permute.xlu0 %396 }
  0xf2   : > { %v487_v34 = vadd.f32 %v486_v51, %v456_v22  ;;  %v458_v35 = vmul.f32 %v397_v26, %v266_v14  ;;  %v459_v40 = vmul.f32 %v402_v54, %v267_v24 }
  0xf4   : > { %v488_v61 = vadd.f32 %v487_v34, %v457_v30 }
  0xf5   : > { %v412_v62 = vpop.permute.xlu1 %411  ;;  %v407_v38 = vpop.permute.xlu0 %406 }
  0xf6   : > { %v489_v60 = vadd.f32 %v488_v61, %v458_v35  ;;  %v460_v45 = vmul.f32 %v407_v38, %v268_v37  ;;  %v461_v57 = vmul.f32 %v412_v62, %v269_v47  ;;  %v540_v37 = vadd.f32 %v539_v63, %v538_v43 }
  0xf8   : > { %v490_v2 = vadd.f32 %v489_v60, %v459_v40  ;;  %v541_v4 = vadd.f32 25.6, %v540_v37 }
  0xf9   : > { %v422_v5 = vpop.permute.xlu1 %421  ;;  %v417_v48 = vpop.permute.xlu0 %416 }
  0xfa   : > { %v491_v0 = vadd.f32 %v490_v2, %v460_v45  ;;  %v462_v14 = vmul.f32 %v417_v48, %v270_v53  ;;  %v463_v24 = vmul.f32 %v422_v5, %v271_v59  ;;  %738 = vrcp.f32 %v541_v4 }
  0xfc   : > { %v492_v39 = vadd.f32 %v491_v0, %v461_v57 }
  0xfd   : > { %v427_v31 = vpop.permute.xlu0 %426  ;;  %v432_v32 = vpop.permute.xlu1 %431 }
  0xfe   : > { %v493_v8 = vadd.f32 %v492_v39, %v462_v14  ;;  %v464_v11 = vmul.f32 %v427_v31, %v272_v1  ;;  %v465_v42 = vmul.f32 %v432_v32, %v273_v25 }
 0x100   : > { %v494_v3 = vadd.f32 %v493_v8, %v463_v24 }
 0x102   : > { %v495_v47 = vadd.f32 %v494_v3, %v464_v11 }
 0x104   : > { %v496_v44 = vadd.f32 %v495_v47, %v465_v42  ;;  %v739_v6 = vpop.eup %738 }
 0x106   : > { %v497_v17 = vrot.slane %v496_v44, 4 }
 0x108   : > { %v498_v50 = vadd.f32 %v497_v17, %v496_v44 }
 0x10a   : > { %v499_v53 = vrot.slane %v498_v50, 2 }
 0x10c   : > { %v500_v20 = vadd.f32 %v499_v53, %v498_v50 }
 0x10e   : > { %v501_v56 = vrot.slane %v500_v20, 1 }
 0x110   : > { %v502_v59 = vadd.f32 %v501_v56, %v500_v20 }
 0x112   : > { %v503_v1 = vadd.f32 128.0128, %v502_v59 }
 0x114   : > { %v543_v25 = vmul.f32 %v739_v6, %v503_v1 }
 0x116   : > { %544 = vst [vmem:[%s177_s22] sm:$0x1] %v543_v25 }
 0x117   : > { %783 = shalt.err (!%p780_p4)
}
 0x118   : > { %s784_s4 = scalar_lea.hbm %s1374_s17, 16  ;;  %s788_s5 = scalar_lea.hbm %s1430_s2, 64 }
 0x119   : > { %p785_p3 = scmp.ne.s32.totalorder %s1374_s17, %s784_s4  ;;  %p789_p2 = scmp.lt.u32.totalorder %s1374_s17, %s1430_s2 }
 0x11a   : > { %p790_p5 = scmp.lt.u32.totalorder %s788_s5, %s784_s4  ;;  %p792_p8 = scmp.lt.u32.totalorder %s784_s4, %s1374_s17 }
 0x11b   : > { %p786_p6 = pnand %p785_p3, %p1437_p9 }
 0x11c   : > { %p791_p10 = por %p790_p5, %p789_p2 }
 0x11d   : > { %p787_p7 = pneg %p786_p6 }
 0x11e   : > { %p793_p12 = por %p792_p8, %p791_p10 }
 0x120   : > { %p794_p0 = pnand %p793_p12, %p787_p7 }
 0x122   : > { %797 = shalt.err (!%p794_p0)
}
 0x123   : > { %656 = dma.vmem_to_hbm [thread:$0]  (%p1437_p9), %s1376_s21, 16, %s1374_s17, %s546_s13  }
 0x124 PF: > { %p667_p11 = scmp.ge.s32.totalorder %s868_s16, 2  ;;  %s572_s7 = sand.u32 1, %s840_s9  }
 0x125   : > { %p1438_p13 = scmp.ne.s32.totalorder %s1435_s28, 0  ;;  %s573_s22 = scalar_lea.sflag [#allocation4], %s572_s7 }
 0x127   : > { %p663_p1 = pnand %p667_p11, %p1438_p13 }
 0x129   : > { %835 = dma.done.wait (!%p663_p1), %s573_s22, 16  }
 0x12a   : > { %837 = vsyncadd (!%p663_p1), %s573_s22, 4294967280  ;;  %s18_s16 = sadd.s32 1, %s868_s16   ;;  %s1439_s9 = smov %s844_s10 }
 0x12b   : > { %p15_p4 = scmp.ge.s32.totalorder %s18_s16, 6   ;;  %s1440_s10 = smov %s848_s11 }
 0x12c   : > { %s1441_s11 = smov %s969_s30  ;;  %s1442_s12 = smov %s860_s14 }
 0x12d   : > { %s1443_s13 = smov %s864_s15  ;;  %s1444_s14 = smov %s1447_s19 }
 0x12e   : > { %s1445_s15 = smov %s1451_s20  ;;  %17 = sbr.rel (!%p15_p4) target bundleno = 7 (0x7), region = 73 }
 0x135   :  { %577 = vsyncpa [#allocation3], 1 }
 0x136   :  { %579 = vsyncpa [#allocation3 + $0x1], 1 }
 0x137   :  { %580 = vsyncpa [#allocation4], 1 }
 0x138   :  { %582 = vsyncpa [#allocation4 + $0x1], 1 }

</bundles_post_ra>
